<compile_context>
chip_gen: v7x
topology: tpu7x:2x2x1
jax: 0.10.0
libtpu: 0.0.40
codegen_flags: <defaults>
</compile_context>

<pallas_src>
import functools

import jax
import jax.numpy as jnp
from jax.experimental import pallas as pl
from jax.experimental.pallas import tpu as pltpu

SEMI_MEMORY = 256            # self.semi_memory_size
MEMORY_SIZE = 3 * SEMI_MEMORY

IN_PAD = 256                 # flattened image (147) zero-padded to one clean 2x128 lane tile
HIDDEN = 256                 # packed hidden width for every fused layer
OUT_PAD = 128                # lane-dense packed output: logits in [0, A), value in lane 127
VALUE_LANE = 127
MAX_BLOCK_B = 1024           # batch tile when B gets large (keeps per-step VMEM bounded)


def ac_fused_kernel(x_ref, w_ref, b_ref, out_ref, *, action_n):
    """x_ref: (Bblk, 256) f32; w_ref: (4, 256, 256) bf16; b_ref: (4, 256) f32;
    out_ref: (Bblk, 128) f32 packed [log_softmax(logits) | ... | value@lane127]."""

    def dense(h, layer):
        # bf16 x bf16 on the MXU, f32 accumulation; bias add stays f32 on the VPU.
        w = w_ref[layer]                       # (256, 256) bf16
        b = b_ref[layer:layer + 1, :]          # (1, 256)   f32
        return jnp.dot(h.astype(jnp.bfloat16), w,
                       preferred_element_type=jnp.float32) + b

    x = x_ref[...]                             # (Bblk, 256) f32, zero-padded lanes >=147

    emb = dense(x, 0)                          # image_conv (no activation)
    h1 = jnp.maximum(dense(emb, 1), 0.0)       # [actor hid128 | critic hid128]
    h2 = jnp.maximum(dense(h1, 2), 0.0)        # [actor 64 | critic 64 | zeros 128]
    raw = dense(h2, 3)[:, :OUT_PAD]            # (Bblk, 128): logits lanes [0,A), value lane 127

    # log_softmax over the real logit lanes only (mask padding + value lane).
    lane = jax.lax.broadcasted_iota(jnp.int32, raw.shape, 1)
    is_logit = lane < action_n
    logits = jnp.where(is_logit, raw, jnp.float32(-1e30))
    m = jnp.max(logits, axis=-1, keepdims=True)
    z = logits - m
    p = jnp.where(is_logit, jnp.exp(z), 0.0)
    lse = jnp.log(jnp.sum(p, axis=-1, keepdims=True))
    logp = z - lse

    # Packed lane-dense output: log-probs where valid, raw (value) elsewhere.
    out_ref[...] = jnp.where(is_logit, logp, raw)


def _init_linear(key, in_dim, out_dim):
    """PyTorch init_params: weight ~ N(0,1) row-normalized, bias = 0.
    Returns weight transposed to (in, out) and bias (out,)."""
    w = jax.random.normal(key, (out_dim, in_dim), dtype=jnp.float32)
    w = w / jnp.sqrt(jnp.sum(w * w, axis=1, keepdims=True))
    return w.T, jnp.zeros((out_dim,), jnp.float32)


def make_params(key, input_size, action_n):
    """Build per-layer params (f32, for the reference) and the packed fused buffers."""
    assert input_size <= IN_PAD and action_n < OUT_PAD
    ks = jax.random.split(key, 7)
    wi, bi = _init_linear(ks[0], input_size, SEMI_MEMORY)   # image_conv
    wa1, ba1 = _init_linear(ks[1], SEMI_MEMORY, 128)        # actor[0]
    wa2, ba2 = _init_linear(ks[2], 128, 64)                 # actor[2]
    wa3, ba3 = _init_linear(ks[3], 64, action_n)            # actor[4]
    wc1, bc1 = _init_linear(ks[4], SEMI_MEMORY, 128)        # critic[0]
    wc2, bc2 = _init_linear(ks[5], 128, 64)                 # critic[2]
    wc3, bc3 = _init_linear(ks[6], 64, 1)                   # critic[4]

    W = jnp.zeros((4, HIDDEN, HIDDEN), jnp.float32)
    B = jnp.zeros((4, HIDDEN), jnp.float32)
    # L0: image_conv (input rows 147..255 are zero -> zero-padded x lanes are inert)
    W = W.at[0, :input_size, :].set(wi)
    B = B.at[0, :].set(bi)
    # L1: [actor.0 | critic.0]
    W = W.at[1, :, :128].set(wa1)
    W = W.at[1, :, 128:].set(wc1)
    B = B.at[1, :128].set(ba1)
    B = B.at[1, 128:].set(bc1)
    # L2: block-diagonal actor.2 / critic.2 (outputs 0:64 actor, 64:128 critic, rest 0)
    W = W.at[2, :128, :64].set(wa2)
    W = W.at[2, 128:256, 64:128].set(wc2)
    B = B.at[2, :64].set(ba2)
    B = B.at[2, 64:128].set(bc2)
    # L3: heads — logits lanes [0, A), critic value at VALUE_LANE
    W = W.at[3, :64, :action_n].set(wa3)
    W = W.at[3, 64:128, VALUE_LANE].set(wc3[:, 0])
    B = B.at[3, :action_n].set(ba3)
    B = B.at[3, VALUE_LANE].set(bc3[0])

    packed = {"w": W.astype(jnp.bfloat16), "b": B}
    raw = [(wi, bi), (wa1, ba1), (wa2, ba2), (wa3, ba3),
           (wc1, bc1), (wc2, bc2), (wc3, bc3)]
    return packed, raw


def _round_up(x, m):
    return ((x + m - 1) // m) * m


def vanilla_ac_forward(image, memory, packed, action_n):
    """image: (B, H, W, C) float; memory: (B, 768).
    Returns (dist log-probs (B, A), value (B,), memory unchanged)."""
    B = image.shape[0]
    x = image.reshape(B, -1).astype(jnp.float32)       # x.reshape(x.shape[0], -1)
    in_size = x.shape[1]
    assert in_size <= IN_PAD

    # Round batch to a full sublane and (for large B) to a multiple of the batch tile.
    Bp = _round_up(max(B, 8), 8)
    block_b = min(Bp, MAX_BLOCK_B)
    Bp = _round_up(Bp, block_b)
    x_pad = jnp.zeros((Bp, IN_PAD), jnp.float32).at[:B, :in_size].set(x)

    grid = (Bp // block_b,)
    out = pl.pallas_call(
        functools.partial(ac_fused_kernel, action_n=action_n),
        out_shape=jax.ShapeDtypeStruct((Bp, OUT_PAD), jnp.float32),
        grid=grid,
        in_specs=[
            pl.BlockSpec((block_b, IN_PAD), lambda i: (i, 0)),
            pl.BlockSpec((4, HIDDEN, HIDDEN), lambda i: (0, 0, 0)),  # weights VMEM-resident
            pl.BlockSpec((4, HIDDEN), lambda i: (0, 0)),
        ],
        out_specs=pl.BlockSpec((block_b, OUT_PAD), lambda i: (i, 0)),
        compiler_params=pltpu.CompilerParams(dimension_semantics=("parallel",)),
    )(x_pad, packed["w"], packed["b"])

    logp = out[:B, :action_n]          # Categorical(logits=log_softmax(actor(x)))
    value = out[:B, VALUE_LANE]        # critic(x).squeeze(1)
    return logp, value, memory         # memory passes through (use_memory=False)
    # TODO(synk): use_memory=True (GRUCell stack) and use_cnn=True (Conv2d stack) paths
    # of the PyTorch module are not implemented here.


def reference_forward(image, raw, action_n):
    """Pure-JAX reference with the same bf16-weight / f32-accumulate discipline."""
    (wi, bi), (wa1, ba1), (wa2, ba2), (wa3, ba3), (wc1, bc1), (wc2, bc2), (wc3, bc3) = raw
    x = image.reshape(image.shape[0], -1).astype(jnp.float32)

    def lin(h, w, b):
        return jnp.dot(h.astype(jnp.bfloat16), w.astype(jnp.bfloat16),
                       preferred_element_type=jnp.float32) + b

    emb = lin(x, wi, bi)
    a = jnp.maximum(lin(emb, wa1, ba1), 0.0)
    a = jnp.maximum(lin(a, wa2, ba2), 0.0)
    logp = jax.nn.log_softmax(lin(a, wa3, ba3), axis=-1)
    c = jnp.maximum(lin(emb, wc1, bc1), 0.0)
    c = jnp.maximum(lin(c, wc2, bc2), 0.0)
    value = lin(c, wc3, bc3)[:, 0]
    return logp, value


if __name__ == "__main__":
    key = jax.random.PRNGKey(0)
    k_img, k_param = jax.random.split(key)

    # obs_space['image'] = (7, 7, 3) -> input_size = 147; action_space.n = 7
    B, H, W, C = 2, 7, 7, 3
    ACTION_N = 7

    image = jax.random.normal(k_img, (B, H, W, C), dtype=jnp.float32)
    memory = jnp.zeros((B, MEMORY_SIZE), dtype=jnp.float32)
    packed, raw = make_params(k_param, H * W * C, ACTION_N)

    logp, value, memory_out = vanilla_ac_forward(image, memory, packed, ACTION_N)
    jax.block_until_ready((logp, value, memory_out))

    assert logp.shape == (B, ACTION_N)
    assert value.shape == (B,)
    assert memory_out.shape == (B, MEMORY_SIZE)
    assert bool(jnp.all(jnp.isfinite(logp))) and bool(jnp.all(jnp.isfinite(value)))
    # log_softmax rows must sum to 1 in prob space
    assert jnp.allclose(jnp.sum(jnp.exp(logp), axis=-1), 1.0, atol=1e-4)

    # Match the pure-JAX reference (same bf16 weight precision) within tight tolerance.
    logp_ref, value_ref = reference_forward(image, raw, ACTION_N)
    assert jnp.allclose(logp, logp_ref, atol=2e-3, rtol=2e-3)
    assert jnp.allclose(value, value_ref, atol=2e-3, rtol=2e-3)

    print("KERNEL_OK")
</pallas_src>

<mosaic_0001>
module attributes {stable_mosaic.version = 11 : i64} {
  func.func @ac_fused_kernel(%arg0: i32, %arg1: memref<8x256xf32, #tpu.memory_space<vmem>>, %arg2: memref<4x256x256xbf16, #tpu.memory_space<vmem>>, %arg3: memref<4x256xf32, #tpu.memory_space<vmem>>, %arg4: memref<8x128xf32, #tpu.memory_space<vmem>>) attributes {dimension_semantics = [#tpu.dimension_semantics<parallel>], iteration_bounds = array<i64: 1>, scalar_prefetch = 0 : i64, scratch_operands = 0 : i64, tpu.core_type = #tpu.core_type<tc>, window_params = [{transform_indices = @transform_0, window_bounds = array<i64: 8, 256>}, {pipeline_mode = #tpu.pipeline_mode<synchronous>, transform_indices = @transform_1, window_bounds = array<i64: 4, 256, 256>}, {pipeline_mode = #tpu.pipeline_mode<synchronous>, transform_indices = @transform_2, window_bounds = array<i64: 4, 256>}, {transform_indices = @transform_3, window_bounds = array<i64: 8, 128>}]} {
    %c0 = arith.constant 0 : index
    %c0_0 = arith.constant 0 : index
    %0 = vector.load %arg1[%c0, %c0_0] : memref<8x256xf32, #tpu.memory_space<vmem>>, vector<8x256xf32>
    %c0_1 = arith.constant 0 : index
    %c0_2 = arith.constant 0 : index
    %c0_3 = arith.constant 0 : index
    %1 = vector.load %arg2[%c0_1, %c0_2, %c0_3] : memref<4x256x256xbf16, #tpu.memory_space<vmem>>, vector<1x256x256xbf16>
    %2 = vector.shape_cast %1 : vector<1x256x256xbf16> to vector<256x256xbf16>
    %c0_4 = arith.constant 0 : index
    %c0_5 = arith.constant 0 : index
    %3 = vector.load %arg3[%c0_4, %c0_5] : memref<4x256xf32, #tpu.memory_space<vmem>>, vector<1x256xf32>
    %4 = arith.truncf %0 : vector<8x256xf32> to vector<8x256xbf16>
    %cst = arith.constant dense<0.000000e+00> : vector<8x256xf32>
    %5 = tpu.matmul %4, %2, %cst {dimension_numbers = #tpu.dot_dimension_numbers<[1], [0], [0], [1], [0, 0, 1, 1], [], []>} : vector<8x256xbf16>, vector<256x256xbf16>, vector<8x256xf32> -> vector<8x256xf32>
    %6 = vector.broadcast %3 : vector<1x256xf32> to vector<8x256xf32>
    %7 = arith.addf %5, %6 : vector<8x256xf32>
    %c1 = arith.constant 1 : index
    %c0_6 = arith.constant 0 : index
    %c0_7 = arith.constant 0 : index
    %8 = vector.load %arg2[%c1, %c0_6, %c0_7] : memref<4x256x256xbf16, #tpu.memory_space<vmem>>, vector<1x256x256xbf16>
    %9 = vector.shape_cast %8 : vector<1x256x256xbf16> to vector<256x256xbf16>
    %c1_8 = arith.constant 1 : index
    %c0_9 = arith.constant 0 : index
    %10 = vector.load %arg3[%c1_8, %c0_9] : memref<4x256xf32, #tpu.memory_space<vmem>>, vector<1x256xf32>
    %11 = arith.truncf %7 : vector<8x256xf32> to vector<8x256xbf16>
    %cst_10 = arith.constant dense<0.000000e+00> : vector<8x256xf32>
    %12 = tpu.matmul %11, %9, %cst_10 {dimension_numbers = #tpu.dot_dimension_numbers<[1], [0], [0], [1], [0, 0, 1, 1], [], []>} : vector<8x256xbf16>, vector<256x256xbf16>, vector<8x256xf32> -> vector<8x256xf32>
    %13 = vector.broadcast %10 : vector<1x256xf32> to vector<8x256xf32>
    %14 = arith.addf %12, %13 : vector<8x256xf32>
    %cst_11 = arith.constant 0.000000e+00 : f32
    %15 = vector.broadcast %cst_11 : f32 to vector<8x256xf32>
    %16 = arith.maximumf %14, %15 : vector<8x256xf32>
    %c2 = arith.constant 2 : index
    %c0_12 = arith.constant 0 : index
    %c0_13 = arith.constant 0 : index
    %17 = vector.load %arg2[%c2, %c0_12, %c0_13] : memref<4x256x256xbf16, #tpu.memory_space<vmem>>, vector<1x256x256xbf16>
    %18 = vector.shape_cast %17 : vector<1x256x256xbf16> to vector<256x256xbf16>
    %c2_14 = arith.constant 2 : index
    %c0_15 = arith.constant 0 : index
    %19 = vector.load %arg3[%c2_14, %c0_15] : memref<4x256xf32, #tpu.memory_space<vmem>>, vector<1x256xf32>
    %20 = arith.truncf %16 : vector<8x256xf32> to vector<8x256xbf16>
    %cst_16 = arith.constant dense<0.000000e+00> : vector<8x256xf32>
    %21 = tpu.matmul %20, %18, %cst_16 {dimension_numbers = #tpu.dot_dimension_numbers<[1], [0], [0], [1], [0, 0, 1, 1], [], []>} : vector<8x256xbf16>, vector<256x256xbf16>, vector<8x256xf32> -> vector<8x256xf32>
    %22 = vector.broadcast %19 : vector<1x256xf32> to vector<8x256xf32>
    %23 = arith.addf %21, %22 : vector<8x256xf32>
    %cst_17 = arith.constant 0.000000e+00 : f32
    %24 = vector.broadcast %cst_17 : f32 to vector<8x256xf32>
    %25 = arith.maximumf %23, %24 : vector<8x256xf32>
    %c3 = arith.constant 3 : index
    %c0_18 = arith.constant 0 : index
    %c0_19 = arith.constant 0 : index
    %26 = vector.load %arg2[%c3, %c0_18, %c0_19] : memref<4x256x256xbf16, #tpu.memory_space<vmem>>, vector<1x256x256xbf16>
    %27 = vector.shape_cast %26 : vector<1x256x256xbf16> to vector<256x256xbf16>
    %c3_20 = arith.constant 3 : index
    %c0_21 = arith.constant 0 : index
    %28 = vector.load %arg3[%c3_20, %c0_21] : memref<4x256xf32, #tpu.memory_space<vmem>>, vector<1x256xf32>
    %29 = arith.truncf %25 : vector<8x256xf32> to vector<8x256xbf16>
    %cst_22 = arith.constant dense<0.000000e+00> : vector<8x256xf32>
    %30 = tpu.matmul %29, %27, %cst_22 {dimension_numbers = #tpu.dot_dimension_numbers<[1], [0], [0], [1], [0, 0, 1, 1], [], []>} : vector<8x256xbf16>, vector<256x256xbf16>, vector<8x256xf32> -> vector<8x256xf32>
    %31 = vector.broadcast %28 : vector<1x256xf32> to vector<8x256xf32>
    %32 = arith.addf %30, %31 : vector<8x256xf32>
    %33 = vector.extract_strided_slice %32 {offsets = [0, 0], sizes = [8, 128], strides = [1, 1]} : vector<8x256xf32> to vector<8x128xf32>
    %34 = tpu.iota {dimensions = array<i32: 1>} : vector<8x128xi32>
    %c7_i32 = arith.constant 7 : i32
    %35 = vector.broadcast %c7_i32 : i32 to vector<8x128xi32>
    %36 = arith.cmpi slt, %34, %35 : vector<8x128xi32>
    %cst_23 = arith.constant -1.000000e+30 : f32
    %37 = vector.broadcast %cst_23 : f32 to vector<8x128xf32>
    %38 = arith.select %36, %33, %37 : vector<8x128xi1>, vector<8x128xf32>
    %cst_24 = arith.constant dense<0xFF800000> : vector<8xf32>
    %39 = vector.multi_reduction <maximumf>, %38, %cst_24 [1] : vector<8x128xf32> to vector<8xf32>
    %40 = vector.shape_cast %39 : vector<8xf32> to vector<8x1xf32>
    %41 = vector.broadcast %40 : vector<8x1xf32> to vector<8x128xf32>
    %42 = arith.subf %38, %41 : vector<8x128xf32>
    %43 = math.exp %42 : vector<8x128xf32>
    %cst_25 = arith.constant 0.000000e+00 : f32
    %44 = vector.broadcast %cst_25 : f32 to vector<8x128xf32>
    %45 = arith.select %36, %43, %44 : vector<8x128xi1>, vector<8x128xf32>
    %cst_26 = arith.constant dense<0.000000e+00> : vector<8xf32>
    %46 = vector.multi_reduction <add>, %45, %cst_26 [1] : vector<8x128xf32> to vector<8xf32>
    %47 = vector.shape_cast %46 : vector<8xf32> to vector<8x1xf32>
    %48 = math.log %47 : vector<8x1xf32>
    %49 = vector.broadcast %48 : vector<8x1xf32> to vector<8x128xf32>
    %50 = arith.subf %42, %49 : vector<8x128xf32>
    %51 = arith.select %36, %50, %33 : vector<8x128xi1>, vector<8x128xf32>
    %c0_27 = arith.constant 0 : index
    %c0_28 = arith.constant 0 : index
    %52 = vector.load %arg4[%c0_27, %c0_28] : memref<8x128xf32, #tpu.memory_space<vmem>>, vector<8x128xf32>
    tpu.vector_store %arg4[%c0_27, %c0_28], %51 {strides = array<i32>} : memref<8x128xf32, #tpu.memory_space<vmem>>, vector<8x128xf32>,
    return
  }
  func.func @transform_0(%arg0: i32) -> (i32, i32) {
    %c0_i32 = arith.constant 0 : i32
    %c0_i32_0 = arith.constant 0 : i32
    return %arg0, %c0_i32 : i32, i32
  }
  func.func @transform_1(%arg0: i32) -> (i32, i32, i32) {
    %c0_i32 = arith.constant 0 : i32
    %c0_i32_0 = arith.constant 0 : i32
    %c0_i32_1 = arith.constant 0 : i32
    %c0_i32_2 = arith.constant 0 : i32
    return %c0_i32, %c0_i32_0, %c0_i32_1 : i32, i32, i32
  }
  func.func @transform_2(%arg0: i32) -> (i32, i32) {
    %c0_i32 = arith.constant 0 : i32
    %c0_i32_0 = arith.constant 0 : i32
    %c0_i32_1 = arith.constant 0 : i32
    return %c0_i32, %c0_i32_0 : i32, i32
  }
  func.func @transform_3(%arg0: i32) -> (i32, i32) {
    %c0_i32 = arith.constant 0 : i32
    %c0_i32_0 = arith.constant 0 : i32
    return %arg0, %c0_i32 : i32, i32
  }
}

</mosaic_0001>

<bundles_post_ra>
// kernel: tpu_custom_call.1
= control target key start
LH: loop header
LB: loop body
LE: loop exit
PB: predicated region body
PF: predicated region fallthrough
CT: control target
= control target key end

     0   :  { %8 = vsyncpa [#allocation3], 0  ;;  %s1593_s0 = inlined_call_operand.hbm [shape: f32[8,256], index: 0, kind: input, shape index: {}]   ;;  %s1594_s1 = inlined_call_operand.hbm [shape: bf16[4,256,256], index: 1, kind: input, shape index: {}]   ;;  %s1595_s2 = inlined_call_operand.hbm [shape: f32[4,256], index: 2, kind: input, shape index: {}]   ;;  %s1596_s3 = inlined_call_operand.hbm [shape: f32[8,128], index: 3, kind: output, shape index: {}]  }
   0x1   :  { %9 = vsyncpa [#allocation6], 0 }
   0x2   :  { %10 = vsyncpa [#allocation4], 0  ;;  %s1503_s12 = smov [#allocation5]   ;;  %s1409_s16 = scalar_lea.hbm %s1594_s1, 16384 }
   0x3   :  { %s26_s13 = sshll.u32 %s1503_s12, 4  ;;  %p1410_p0 = scmp.ne.s32.totalorder %s1594_s1, %s1409_s16  ;;  %s27_s13 = int_to_ptr.vmem [resolvable:$true] %s26_s13 }
   0x4   :  { %p1413_p1 = scmp.lt.u32.totalorder %s1409_s16, %s1594_s1 }
   0x6   :  { %p1415_p2 = pnand %p1413_p1, %p1410_p0 }
   0x8   :  { %1418 = shalt.err (!%p1415_p2)
}
   0x9   :  { %s1419_s21 = scalar_lea.vmem %s27_s13, 16384  ;;  %p1424_p4 = scmp.lt.s32.totalorder %s27_s13, %s27_s13 }
   0xa   :  { %p1420_p3 = scmp.ne.s32.totalorder %s27_s13, %s1419_s21  ;;  %p1425_p5 = scmp.lt.s32.totalorder %s1419_s21, %s1419_s21 }
   0xc   :  { %p1426_p6 = por %p1425_p5, %p1424_p4 }
   0xe   :  { %p1427_p7 = pnand %p1426_p6, %p1420_p3 }
  0x10   :  { %1430 = shalt.err (!%p1427_p7)
}
  0x11   :  { %s1504_s22 = smov 128   ;;  %s1505_s23 = smov 8  }
  0x12   :  { %32 = dma.hbm_to_vmem [thread:$0]  %s1594_s1, 16384, %s27_s13, [#allocation6], %s1504_s22, %s1504_s22, %s1505_s23  }
  0x13   :  { %s1506_s26 = smov [#allocation2]   ;;  %s1507_s28 = smov [#allocation7]  }
  0x14   :  { %s17_s27 = sshll.u32 %s1506_s26, 4  ;;  %s39_s29 = sshll.u32 %s1507_s28, 4  ;;  %s18_s27 = int_to_ptr.vmem [resolvable:$true] %s17_s27  ;;  %s40_s29 = int_to_ptr.vmem [resolvable:$true] %s39_s29 }
  0x15   :  { %s1431_s5 = scalar_lea.hbm %s1593_s0, 256 }
  0x16   :  { %p1432_p8 = scmp.ne.s32.totalorder %s1593_s0, %s1431_s5  ;;  %p1435_p9 = scmp.lt.u32.totalorder %s1431_s5, %s1593_s0 }
  0x18   :  { %p1437_p10 = pnand %p1435_p9, %p1432_p8 }
  0x1a   :  { %1440 = shalt.err (!%p1437_p10)
}
  0x1b   :  { %s1441_s1 = scalar_lea.vmem %s18_s27, 256  ;;  %p1446_p12 = scmp.lt.s32.totalorder %s18_s27, %s18_s27 }
  0x1c   :  { %p1442_p11 = scmp.ne.s32.totalorder %s18_s27, %s1441_s1  ;;  %p1447_p13 = scmp.lt.s32.totalorder %s1441_s1, %s1441_s1 }
  0x1e   :  { %p1448_p0 = por %p1447_p13, %p1446_p12 }
  0x20   :  { %p1449_p1 = pnand %p1448_p0, %p1442_p11 }
  0x22   :  { %1452 = shalt.err (!%p1449_p1)
}
  0x23   :  { %20 = dma.hbm_to_vmem [thread:$0]  %s1593_s0, 256, %s18_s27, [#allocation3]  }
  0x24   :  { %s1453_s14 = scalar_lea.hbm %s1595_s2, 128 }
  0x25   :  { %p1454_p2 = scmp.ne.s32.totalorder %s1595_s2, %s1453_s14  ;;  %p1457_p3 = scmp.lt.u32.totalorder %s1453_s14, %s1595_s2 }
  0x27   :  { %p1459_p4 = pnand %p1457_p3, %p1454_p2 }
  0x29   :  { %1462 = shalt.err (!%p1459_p4)
}
  0x2a   :  { %s1463_s19 = scalar_lea.vmem %s40_s29, 128  ;;  %p1468_p6 = scmp.lt.s32.totalorder %s40_s29, %s40_s29 }
  0x2b   :  { %p1464_p5 = scmp.ne.s32.totalorder %s40_s29, %s1463_s19  ;;  %p1469_p7 = scmp.lt.s32.totalorder %s1463_s19, %s1463_s19 }
  0x2d   :  { %p1470_p8 = por %p1469_p7, %p1468_p6 }
  0x2f   :  { %p1471_p9 = pnand %p1470_p8, %p1464_p5 }
  0x31   :  { %1474 = shalt.err (!%p1471_p9)
}
  0x32   :  { %42 = dma.hbm_to_vmem [thread:$0]  %s1595_s2, 128, %s40_s29, [#allocation6]  }
  0x33   :  { %1497 = dma.done.wait [#allocation3], 256  }
  0x34   :  { %1498 = vsyncadd [#allocation3], 4294967040 }
  0x35   :  { %1499 = dma.done.wait [#allocation6], 16512  }
  0x36   :  { %1500 = vsyncadd [#allocation6], 4294950784  ;;  %v1213_v0 = vld [vmem:[#allocation5 + $0x4] ss:$8 sps:$4 sm:$0xff]   ;;  %v1215_v1 = vld [vmem:[#allocation5] ss:$8 sps:$4 sm:$0xff]  }
  0x37   :  { %260 = vmatprep.subr.bf16.mxu0 %v1213_v0  ;;  %v1216_v2 = vld [vmem:[#allocation5 + $0x14] ss:$8 sps:$4 sm:$0xff]   ;;  %v1218_v3 = vld [vmem:[#allocation5 + $0x10] ss:$8 sps:$4 sm:$0xff]   ;;  %v1219_v4 = vld [vmem:[#allocation5 + $0x24] ss:$8 sps:$4 sm:$0xff]  }
  0x38   :  { %261 = vmatpush1.bf16.msra.mxu0 %v1215_v1  ;;  %v1221_v5 = vld [vmem:[#allocation5 + $0x20] ss:$8 sps:$4 sm:$0xff]   ;;  %v1222_v6 = vld [vmem:[#allocation5 + $0x34] ss:$8 sps:$4 sm:$0xff]   ;;  %v1224_v7 = vld [vmem:[#allocation5 + $0x30] ss:$8 sps:$4 sm:$0xff]  }
  0x39   :  { %262 = vmatprep.subr.bf16.mxu0 %v1216_v2  ;;  %v1225_v8 = vld [vmem:[#allocation5 + $0x44] ss:$8 sps:$4 sm:$0xff]   ;;  %v1227_v9 = vld [vmem:[#allocation5 + $0x40] ss:$8 sps:$4 sm:$0xff]   ;;  %v1228_v10 = vld [vmem:[#allocation5 + $0x54] ss:$8 sps:$4 sm:$0xff]  }
  0x3a   :  { %v1230_v11 = vld [vmem:[#allocation5 + $0x50] ss:$8 sps:$4 sm:$0xff]   ;;  %v1231_v12 = vld [vmem:[#allocation5 + $0x64] ss:$8 sps:$4 sm:$0xff]   ;;  %v1233_v13 = vld [vmem:[#allocation5 + $0x60] ss:$8 sps:$4 sm:$0xff]  }
  0x3b   :  { %v53_v14 = vld [vmem:[#allocation2 + $0x8] sm:$0xff]  ;;  %v1261_v16 = vld [vmem:[#allocation5 + $0x104] ss:$8 sps:$4 sm:$0xff]   ;;  %v1263_v17 = vld [vmem:[#allocation5 + $0x100] ss:$8 sps:$4 sm:$0xff]   ;;  %s1508_s2 = smov [#allocation8]  }
  0x3c   :  { %263 = vmatpush1.bf16.msra.mxu0 %v1218_v3  ;;  %v88_v15 = vpack.c.bf16 %v53_v14, %v53_v14  ;;  %v1234_v18 = vld [vmem:[#allocation5 + $0x74] ss:$8 sps:$4 sm:$0xff]   ;;  %v1236_v20 = vld [vmem:[#allocation5 + $0x70] ss:$8 sps:$4 sm:$0xff]   ;;  %509 = vmatprep.subr.bf16.mxu1 %v1261_v16  ;;  %v1267_v22 = vld [vmem:[#allocation5 + $0x124] ss:$8 sps:$4 sm:$0xff]  }
  0x3d   :  { %264 = vmatprep.subr.bf16.mxu0 %v1219_v4  ;;  %v1264_v19 = vld [vmem:[#allocation5 + $0x114] ss:$8 sps:$4 sm:$0xff]   ;;  %510 = vmatpush1.bf16.msra.mxu1 %v1263_v17  ;;  %v1266_v21 = vld [vmem:[#allocation5 + $0x110] ss:$8 sps:$4 sm:$0xff]   ;;  %v1237_v23 = vld [vmem:[#allocation5 + $0x84] ss:$8 sps:$4 sm:$0xff]  }
  0x3e   :  { %292 = vmatprep.mubr.bf16.mxu0 %v88_v15  ;;  %511 = vmatprep.subr.bf16.mxu1 %v1264_v19  ;;  %v1239_v24 = vld [vmem:[#allocation5 + $0x80] ss:$8 sps:$4 sm:$0xff]   ;;  %v1270_v26 = vld [vmem:[#allocation5 + $0x134] ss:$8 sps:$4 sm:$0xff]   ;;  %v1242_v28 = vld [vmem:[#allocation5 + $0x90] ss:$8 sps:$4 sm:$0xff]  }
  0x3f   :  { %v1269_v25 = vld [vmem:[#allocation5 + $0x120] ss:$8 sps:$4 sm:$0xff]   ;;  %v1240_v27 = vld [vmem:[#allocation5 + $0x94] ss:$8 sps:$4 sm:$0xff]   ;;  %v1272_v29 = vld [vmem:[#allocation5 + $0x130] ss:$8 sps:$4 sm:$0xff]  }
  0x40   :  { %265 = vmatpush1.bf16.msra.mxu0 %v1221_v5  ;;  %v1273_v30 = vld [vmem:[#allocation5 + $0x144] ss:$8 sps:$4 sm:$0xff]   ;;  %v1245_v32 = vld [vmem:[#allocation5 + $0xa0] ss:$8 sps:$4 sm:$0xff]   ;;  %v1276_v34 = vld [vmem:[#allocation5 + $0x154] ss:$8 sps:$4 sm:$0xff]  }
  0x41   :  { %266 = vmatprep.subr.bf16.mxu0 %v1222_v6  ;;  %512 = vmatpush1.bf16.msra.mxu1 %v1266_v21  ;;  %v1243_v31 = vld [vmem:[#allocation5 + $0xa4] ss:$8 sps:$4 sm:$0xff]   ;;  %v1275_v33 = vld [vmem:[#allocation5 + $0x140] ss:$8 sps:$4 sm:$0xff]   ;;  %v1246_v35 = vld [vmem:[#allocation5 + $0xb4] ss:$8 sps:$4 sm:$0xff]  }
  0x42   :  { %513 = vmatprep.subr.bf16.mxu1 %v1267_v22  ;;  %v1248_v36 = vld [vmem:[#allocation5 + $0xb0] ss:$8 sps:$4 sm:$0xff]   ;;  %v1279_v38 = vld [vmem:[#allocation5 + $0x164] ss:$8 sps:$4 sm:$0xff]   ;;  %v1281_v40 = vld [vmem:[#allocation5 + $0x160] ss:$8 sps:$4 sm:$0xff]  }
  0x43   :  { %v1278_v37 = vld [vmem:[#allocation5 + $0x150] ss:$8 sps:$4 sm:$0xff]   ;;  %v1249_v39 = vld [vmem:[#allocation5 + $0xc4] ss:$8 sps:$4 sm:$0xff]   ;;  %v1251_v41 = vld [vmem:[#allocation5 + $0xc0] ss:$8 sps:$4 sm:$0xff]  }
  0x44   :  { %267 = vmatpush1.bf16.msra.mxu0 %v1224_v7  ;;  %v1282_v42 = vld [vmem:[#allocation5 + $0x174] ss:$8 sps:$4 sm:$0xff]   ;;  %v1284_v44 = vld [vmem:[#allocation5 + $0x170] ss:$8 sps:$4 sm:$0xff]   ;;  %v1285_v46 = vld [vmem:[#allocation5 + $0x184] ss:$8 sps:$4 sm:$0xff]  }
  0x45   :  { %268 = vmatprep.subr.bf16.mxu0 %v1225_v8  ;;  %514 = vmatpush1.bf16.msra.mxu1 %v1269_v25  ;;  %v1252_v43 = vld [vmem:[#allocation5 + $0xd4] ss:$8 sps:$4 sm:$0xff]   ;;  %v1254_v45 = vld [vmem:[#allocation5 + $0xd0] ss:$8 sps:$4 sm:$0xff]   ;;  %v1255_v47 = vld [vmem:[#allocation5 + $0xe4] ss:$8 sps:$4 sm:$0xff]  }
  0x46   :  { %515 = vmatprep.subr.bf16.mxu1 %v1270_v26  ;;  %v1287_v48 = vld [vmem:[#allocation5 + $0x180] ss:$8 sps:$4 sm:$0xff]   ;;  %v1288_v50 = vld [vmem:[#allocation5 + $0x194] ss:$8 sps:$4 sm:$0xff]   ;;  %v1290_v52 = vld [vmem:[#allocation5 + $0x190] ss:$8 sps:$4 sm:$0xff]  }
  0x47   :  { %v1257_v49 = vld [vmem:[#allocation5 + $0xe0] ss:$8 sps:$4 sm:$0xff]   ;;  %v1258_v51 = vld [vmem:[#allocation5 + $0xf4] ss:$8 sps:$4 sm:$0xff]   ;;  %v1260_v53 = vld [vmem:[#allocation5 + $0xf0] ss:$8 sps:$4 sm:$0xff]  }
  0x48   :  { %269 = vmatpush1.bf16.msra.mxu0 %v1227_v9  ;;  %v52_v54 = vld [vmem:[#allocation2] sm:$0xff]  ;;  %v1291_v55 = vld [vmem:[#allocation5 + $0x1a4] ss:$8 sps:$4 sm:$0xff]   ;;  %v1293_v56 = vld [vmem:[#allocation5 + $0x1a0] ss:$8 sps:$4 sm:$0xff]   ;;  %s1069_s21 = sshll.u32 %s1508_s2, 4  ;;  %s1070_s21 = int_to_ptr.vmem [resolvable:$true] %s1069_s21 }
  0x49   :  { %270 = vmatprep.subr.bf16.mxu0 %v1228_v10  ;;  %516 = vmatpush1.bf16.msra.mxu1 %v1272_v29  ;;  %v1294_v57 = vld [vmem:[#allocation5 + $0x1b4] ss:$8 sps:$4 sm:$0xff]   ;;  %v87_v58 = vpack.c.bf16 %v52_v54, %v52_v54  ;;  %v1296_v59 = vld [vmem:[#allocation5 + $0x1b0] ss:$8 sps:$4 sm:$0xff]   ;;  %v1297_v60 = vld [vmem:[#allocation5 + $0x1c4] ss:$8 sps:$4 sm:$0xff]   ;;  %p1480_p11 = scmp.lt.s32.totalorder %s1070_s21, %s1070_s21 }
  0x4a   :  { %517 = vmatprep.subr.bf16.mxu1 %v1273_v30  ;;  %v1299_v61 = vld [vmem:[#allocation5 + $0x1c0] ss:$8 sps:$4 sm:$0xff]   ;;  %v1300_v62 = vld [vmem:[#allocation5 + $0x1d4] ss:$8 sps:$4 sm:$0xff]   ;;  %v1302_v63 = vld [vmem:[#allocation5 + $0x1d0] ss:$8 sps:$4 sm:$0xff]  }
  0x4b   :  { %v1303_v0 = vld [vmem:[#allocation5 + $0x1e4] ss:$8 sps:$4 sm:$0xff]   ;;  %v1305_v1 = vld [vmem:[#allocation5 + $0x1e0] ss:$8 sps:$4 sm:$0xff]   ;;  %v1306_v2 = vld [vmem:[#allocation5 + $0x1f4] ss:$8 sps:$4 sm:$0xff]  }
  0x4c   :  { %271 = vmatpush1.bf16.msra.mxu0 %v1230_v11  ;;  %v1308_v3 = vld [vmem:[#allocation5 + $0x1f0] ss:$8 sps:$4 sm:$0xff]   ;;  %v1309_v4 = vld [vmem:[#allocation5 + $0x200] ss:$8 sps:$4 sm:$0xff]   ;;  %v1311_v5 = vld [vmem:[#allocation5 + $0x204] ss:$8 sps:$4 sm:$0xff]  }
  0x4d   :  { %272 = vmatprep.subr.bf16.mxu0 %v1231_v12  ;;  %518 = vmatpush1.bf16.msra.mxu1 %v1275_v33  ;;  %v1314_v6 = vld [vmem:[#allocation5 + $0x214] ss:$8 sps:$4 sm:$0xff]   ;;  %v1312_v7 = vld [vmem:[#allocation5 + $0x210] ss:$8 sps:$4 sm:$0xff]   ;;  %v1317_v8 = vld [vmem:[#allocation5 + $0x224] ss:$8 sps:$4 sm:$0xff]  }
  0x4e   :  { %519 = vmatprep.subr.bf16.mxu1 %v1276_v34  ;;  %v1315_v9 = vld [vmem:[#allocation5 + $0x220] ss:$8 sps:$4 sm:$0xff]   ;;  %v1320_v10 = vld [vmem:[#allocation5 + $0x234] ss:$8 sps:$4 sm:$0xff]   ;;  %v1318_v11 = vld [vmem:[#allocation5 + $0x230] ss:$8 sps:$4 sm:$0xff]  }
  0x4f   :  { %v1323_v12 = vld [vmem:[#allocation5 + $0x244] ss:$8 sps:$4 sm:$0xff]   ;;  %v1326_v14 = vld [vmem:[#allocation5 + $0x254] ss:$8 sps:$4 sm:$0xff]   ;;  %v1324_v15 = vld [vmem:[#allocation5 + $0x250] ss:$8 sps:$4 sm:$0xff]  }
  0x50   :  { %273 = vmatpush1.bf16.msra.mxu0 %v1233_v13  ;;  %v1321_v13 = vld [vmem:[#allocation5 + $0x240] ss:$8 sps:$4 sm:$0xff]   ;;  %v1329_v16 = vld [vmem:[#allocation5 + $0x264] ss:$8 sps:$4 sm:$0xff]   ;;  %v1330_v19 = vld [vmem:[#allocation5 + $0x270] ss:$8 sps:$4 sm:$0xff]  }
  0x51   :  { %274 = vmatprep.subr.bf16.mxu0 %v1234_v18  ;;  %520 = vmatpush1.bf16.msra.mxu1 %v1278_v37  ;;  %v1327_v17 = vld [vmem:[#allocation5 + $0x260] ss:$8 sps:$4 sm:$0xff]   ;;  %v1332_v18 = vld [vmem:[#allocation5 + $0x274] ss:$8 sps:$4 sm:$0xff]   ;;  %v1360_v54 = vld [vmem:[#allocation5 + $0x310] ss:$8 sps:$4 sm:$0xff]  }
  0x52   :  { %521 = vmatprep.subr.bf16.mxu1 %v1279_v38  ;;  %v1333_v21 = vld [vmem:[#allocation5 + $0x280] ss:$8 sps:$4 sm:$0xff]   ;;  %v1338_v22 = vld [vmem:[#allocation5 + $0x294] ss:$8 sps:$4 sm:$0xff]   ;;  %s1475_s22 = scalar_lea.vmem %s1070_s21, 128 }
  0x53   :  { %v1339_v25 = vld [vmem:[#allocation5 + $0x2a0] ss:$8 sps:$4 sm:$0xff]   ;;  %v1344_v26 = vld [vmem:[#allocation5 + $0x2b4] ss:$8 sps:$4 sm:$0xff]   ;;  %p1476_p10 = scmp.ne.s32.totalorder %s1070_s21, %s1475_s22  ;;  %p1481_p12 = scmp.lt.s32.totalorder %s1475_s22, %s1475_s22 }
  0x54   :  { %275 = vmatpush1.bf16.msra.mxu0 %v1236_v20  ;;  %v1335_v20 = vld [vmem:[#allocation5 + $0x284] ss:$8 sps:$4 sm:$0xff]   ;;  %v1345_v29 = vld [vmem:[#allocation5 + $0x2c0] ss:$8 sps:$4 sm:$0xff]   ;;  %v1350_v30 = vld [vmem:[#allocation5 + $0x2d4] ss:$8 sps:$4 sm:$0xff]  }
  0x55   :  { %276 = vmatprep.subr.bf16.mxu0 %v1237_v23  ;;  %522 = vmatpush1.bf16.msra.mxu1 %v1281_v40  ;;  %v1336_v23 = vld [vmem:[#allocation5 + $0x290] ss:$8 sps:$4 sm:$0xff]   ;;  %p1482_p13 = por %p1481_p12, %p1480_p11 }
  0x56   :  { %523 = vmatprep.subr.bf16.mxu1 %v1282_v42 }
  0x57   :  { %p1483_p0 = pnand %p1482_p13, %p1476_p10 }
  0x58   :  { %277 = vmatpush1.bf16.msra.mxu0 %v1239_v24  ;;  %v1341_v24 = vld [vmem:[#allocation5 + $0x2a4] ss:$8 sps:$4 sm:$0xff]  }
  0x59   :  { %278 = vmatprep.subr.bf16.mxu0 %v1240_v27  ;;  %524 = vmatpush1.bf16.msra.mxu1 %v1284_v44  ;;  %v1342_v27 = vld [vmem:[#allocation5 + $0x2b0] ss:$8 sps:$4 sm:$0xff]  }
  0x5a   :  { %525 = vmatprep.subr.bf16.mxu1 %v1285_v46 }
  0x5c   :  { %279 = vmatpush1.bf16.msra.mxu0 %v1242_v28  ;;  %v1347_v28 = vld [vmem:[#allocation5 + $0x2c4] ss:$8 sps:$4 sm:$0xff]  }
  0x5d   :  { %280 = vmatprep.subr.bf16.mxu0 %v1243_v31  ;;  %526 = vmatpush1.bf16.msra.mxu1 %v1287_v48  ;;  %v1348_v31 = vld [vmem:[#allocation5 + $0x2d0] ss:$8 sps:$4 sm:$0xff]   ;;  %v1351_v48 = vld [vmem:[#allocation5 + $0x2e0] ss:$8 sps:$4 sm:$0xff]  }
  0x5e   :  { %527 = vmatprep.subr.bf16.mxu1 %v1288_v50  ;;  %v1354_v50 = vld [vmem:[#allocation5 + $0x2f0] ss:$8 sps:$4 sm:$0xff]  }
  0x60   :  { %281 = vmatpush1.bf16.msra.mxu0 %v1245_v32  ;;  %v90_v32 = vlaneseq }
  0x61   :  { %282 = vmatprep.subr.bf16.mxu0 %v1246_v35  ;;  %528 = vmatpush1.bf16.msra.mxu1 %v1290_v52  ;;  %v86_v35 = vld [vmem:[#allocation7] ss:$4 sm:$0x3] }
  0x62   :  { %529 = vmatprep.subr.bf16.mxu1 %v1291_v55  ;;  %v91_v33 = vshrl.u32 %v90_v32, 7  ;;  %v1359_v52 = vld [vmem:[#allocation5 + $0x304] ss:$8 sps:$4 sm:$0xff]  }
  0x63   :  { %v1365_v55 = vld [vmem:[#allocation5 + $0x324] ss:$8 sps:$4 sm:$0xff]  }
  0x64   :  { %283 = vmatpush1.bf16.msra.mxu0 %v1248_v36  ;;  %v1566_v34 = vsub.s32 0, %v91_v33  ;;  %v1568_v36 = vsub.s32 1, %v91_v33  ;;  %v586_v33 = vld [vmem:[#allocation7 + $0x2] ss:$4 sm:$0x3] }
  0x65   :  { %284 = vmatprep.subr.bf16.mxu0 %v1249_v39  ;;  %530 = vmatpush1.bf16.msra.mxu1 %v1293_v56  ;;  %v1363_v56 = vld [vmem:[#allocation5 + $0x320] ss:$8 sps:$4 sm:$0xff]  }
  0x66   :  { %531 = vmatprep.subr.bf16.mxu1 %v1294_v57  ;;  %v93_v37 = vrot.slane %v86_v35, %v1566_v34  ;;  %v97_v38 = vrot.slane %v86_v35, %v1568_v36  ;;  %v1368_v57 = vld [vmem:[#allocation5 + $0x334] ss:$8 sps:$4 sm:$0xff]   ;;  %v593_v35 = vrot.slane %v586_v33, %v1566_v34 }
  0x68   :  { %285 = vmatpush1.bf16.msra.mxu0 %v1251_v41 }
  0x69   :  { %286 = vmatprep.subr.bf16.mxu0 %v1252_v43  ;;  %532 = vmatpush1.bf16.msra.mxu1 %v1296_v59  ;;  %v1371_v59 = vld [vmem:[#allocation5 + $0x344] ss:$8 sps:$4 sm:$0xff]  }
  0x6a   :  { %533 = vmatprep.subr.bf16.mxu1 %v1297_v60  ;;  %v1369_v60 = vld [vmem:[#allocation5 + $0x340] ss:$8 sps:$4 sm:$0xff]  }
  0x6c   :  { %287 = vmatpush1.bf16.msra.mxu0 %v1254_v45 }
  0x6d   :  { %288 = vmatprep.subr.bf16.mxu0 %v1255_v47  ;;  %534 = vmatpush1.bf16.msra.mxu1 %v1299_v61  ;;  %v1353_v47 = vld [vmem:[#allocation5 + $0x2e4] ss:$8 sps:$4 sm:$0xff]   ;;  %v1374_v61 = vld [vmem:[#allocation5 + $0x354] ss:$8 sps:$4 sm:$0xff]  }
  0x6e   :  { %535 = vmatprep.subr.bf16.mxu1 %v1300_v62  ;;  %v1372_v62 = vld [vmem:[#allocation5 + $0x350] ss:$8 sps:$4 sm:$0xff]  }
  0x70   :  { %289 = vmatpush1.bf16.msra.mxu0 %v1257_v49  ;;  %v1356_v49 = vld [vmem:[#allocation5 + $0x2f4] ss:$8 sps:$4 sm:$0xff]  }
  0x71   :  { %290 = vmatprep.subr.bf16.mxu0 %v1258_v51  ;;  %536 = vmatpush1.bf16.msra.mxu1 %v1302_v63  ;;  %v1357_v51 = vld [vmem:[#allocation5 + $0x300] ss:$8 sps:$4 sm:$0xff]   ;;  %v1377_v63 = vld [vmem:[#allocation5 + $0x364] ss:$8 sps:$4 sm:$0xff]  }
  0x72   :  { %537 = vmatprep.subr.bf16.mxu1 %v1303_v0  ;;  %v1375_v0 = vld [vmem:[#allocation5 + $0x360] ss:$8 sps:$4 sm:$0xff]  }
  0x74   :  { %291 = vmatpush1.bf16.msra.mxu0 %v1260_v53  ;;  %v1362_v53 = vld [vmem:[#allocation5 + $0x314] ss:$8 sps:$4 sm:$0xff]  }
  0x75   :  { %538 = vmatpush1.bf16.msra.mxu1 %v1305_v1  ;;  %760 = vmatprep.subr.bf16.mxu0 %v1311_v5  ;;  %v1380_v1 = vld [vmem:[#allocation5 + $0x374] ss:$8 sps:$4 sm:$0xff]  }
  0x76   :  { %539 = vmatprep.subr.bf16.mxu1 %v1306_v2  ;;  %v1378_v2 = vld [vmem:[#allocation5 + $0x370] ss:$8 sps:$4 sm:$0xff]   ;;  %v1386_v5 = vld [vmem:[#allocation5 + $0x394] ss:$8 sps:$4 sm:$0xff]  }
  0x77   :  { %293 = vmatmul.mubr.bf16.vlgmr.msra.gmra.mrb[0].mxu0 %v87_v58  ;;  %v1366_v58 = vld [vmem:[#allocation5 + $0x330] ss:$8 sps:$4 sm:$0xff]  }
  0x78   :  { %761 = vmatpush1.bf16.msra.mxu0 %v1309_v4  ;;  %v1381_v4 = vld [vmem:[#allocation5 + $0x380] ss:$8 sps:$4 sm:$0xff]  }
  0x79   :  { %540 = vmatpush1.bf16.msra.mxu1 %v1308_v3  ;;  %762 = vmatprep.subr.bf16.mxu0 %v1314_v6  ;;  %v1383_v3 = vld [vmem:[#allocation5 + $0x384] ss:$8 sps:$4 sm:$0xff]   ;;  %v1384_v6 = vld [vmem:[#allocation5 + $0x390] ss:$8 sps:$4 sm:$0xff]  }
  0x7a   :  { %1006 = vmatprep.subr.bf16.mxu1 %v1359_v52 }
  0x7c   :  { %763 = vmatpush1.bf16.msra.mxu0 %v1312_v7  ;;  %v1389_v7 = vld [vmem:[#allocation5 + $0x3a4] ss:$8 sps:$4 sm:$0xff]  }
  0x7d   :  { %764 = vmatprep.subr.bf16.mxu0 %v1317_v8  ;;  %v1387_v8 = vld [vmem:[#allocation5 + $0x3a0] ss:$8 sps:$4 sm:$0xff]  }
  0x80   :  { %765 = vmatpush1.bf16.msra.mxu0 %v1315_v9  ;;  %v1392_v9 = vld [vmem:[#allocation5 + $0x3b4] ss:$8 sps:$4 sm:$0xff]  }
  0x81   :  { %766 = vmatprep.subr.bf16.mxu0 %v1320_v10  ;;  %v1390_v10 = vld [vmem:[#allocation5 + $0x3b0] ss:$8 sps:$4 sm:$0xff]  }
  0x84   :  { %767 = vmatpush1.bf16.msra.mxu0 %v1318_v11  ;;  %v1395_v11 = vld [vmem:[#allocation5 + $0x3c4] ss:$8 sps:$4 sm:$0xff]  }
  0x85   :  { %768 = vmatprep.subr.bf16.mxu0 %v1323_v12  ;;  %v1393_v12 = vld [vmem:[#allocation5 + $0x3c0] ss:$8 sps:$4 sm:$0xff]  }
  0x88   :  { %769 = vmatpush1.bf16.msra.mxu0 %v1321_v13  ;;  %v1398_v13 = vld [vmem:[#allocation5 + $0x3d4] ss:$8 sps:$4 sm:$0xff]  }
  0x89   :  { %770 = vmatprep.subr.bf16.mxu0 %v1326_v14  ;;  %v1396_v14 = vld [vmem:[#allocation5 + $0x3d0] ss:$8 sps:$4 sm:$0xff]  }
  0x8c   :  { %771 = vmatpush1.bf16.msra.mxu0 %v1324_v15  ;;  %v335_v15 = vld [vmem:[#allocation7 + $0x1] ss:$4 sm:$0x3] }
  0x8d   :  { %772 = vmatprep.subr.bf16.mxu0 %v1329_v16  ;;  %v342_v16 = vrot.slane %v335_v15, %v1566_v34 }
  0x90   :  { %773 = vmatpush1.bf16.msra.mxu0 %v1327_v17  ;;  %v346_v17 = vrot.slane %v335_v15, %v1568_v36 }
  0x91   :  { %774 = vmatprep.subr.bf16.mxu0 %v1332_v18 }
  0x94   :  { %775 = vmatpush1.bf16.msra.mxu0 %v1330_v19 }
  0x95   :  { %776 = vmatprep.subr.bf16.mxu0 %v1335_v20 }
  0x98   :  { %777 = vmatpush1.bf16.msra.mxu0 %v1333_v21 }
  0x99   :  { %778 = vmatprep.subr.bf16.mxu0 %v1338_v22 }
  0x9c   :  { %779 = vmatpush1.bf16.msra.mxu0 %v1336_v23 }
  0x9d   :  { %780 = vmatprep.subr.bf16.mxu0 %v1341_v24 }
  0xa0   :  { %781 = vmatpush1.bf16.msra.mxu0 %v1339_v25 }
  0xa1   :  { %782 = vmatprep.subr.bf16.mxu0 %v1344_v26 }
  0xa4   :  { %783 = vmatpush1.bf16.msra.mxu0 %v1342_v27 }
  0xa5   :  { %784 = vmatprep.subr.bf16.mxu0 %v1347_v28  ;;  %v1401_v28 = vld [vmem:[#allocation5 + $0x3e4] ss:$8 sps:$4 sm:$0xff]  }
  0xa8   :  { %785 = vmatpush1.bf16.msra.mxu0 %v1345_v29  ;;  %v1399_v29 = vld [vmem:[#allocation5 + $0x3e0] ss:$8 sps:$4 sm:$0xff]  }
  0xa9   :  { %786 = vmatprep.subr.bf16.mxu0 %v1350_v30  ;;  %v1404_v30 = vld [vmem:[#allocation5 + $0x3f4] ss:$8 sps:$4 sm:$0xff]  }
  0xac   :  { %787 = vmatpush1.bf16.msra.mxu0 %v1348_v31  ;;  %v1402_v31 = vld [vmem:[#allocation5 + $0x3f0] ss:$8 sps:$4 sm:$0xff]  }
  0xad   :  { %788 = vmatprep.subr.bf16.mxu0 %v1353_v47 }
  0xb0   :  { %789 = vmatpush1.bf16.msra.mxu0 %v1351_v48  ;;  %v837_v48 = vld [vmem:[#allocation7 + $0x3] ss:$4 sm:$0x3] }
  0xb1   :  { %790 = vmatprep.subr.bf16.mxu0 %v1356_v49  ;;  %v1047_v49 = vand.u32 127, %v90_v32 }
  0xb3   :  { %vm1048_vm0 = vcmp.lt.s32.totalorder %v1047_v49, 7 }
  0xb4   :  { %791 = vmatpush1.bf16.msra.mxu0 %v1354_v50  ;;  %v844_v50 = vrot.slane %v837_v48, %v1566_v34 }
 0x14a   :  { %v294_v39 = vpop.f32.mrb[0].mxu0 }
 0x14b   :  { %v295_v40 = vadd.f32 %v294_v39, %v93_v37  ;;  %v296_v41 = vpop.f32.mrb[1].mxu0  ;;  %v597_v37 = vrot.slane %v586_v33, %v1568_v36 }
 0x14c   :  { %v298_v42 = vpop.f32.mrb[2].mxu0  ;;  %v297_v43 = vadd.f32 %v296_v41, %v97_v38 }
 0x14d   :  { %v299_v44 = vpop.f32.mrb[3].mxu0  ;;  %v336_v46 = vpack.c.bf16 %v295_v40, %v295_v40 }
 0x14e   :  { %v337_v45 = vpack.c.bf16 %v297_v43, %v297_v43 }
 0x150   :  { %541 = vmatprep.mubr.bf16.mxu1 %v337_v45 }
 0x151   :  { %542 = vmatmul.mubr.bf16.vlgmr.msra.gmra.mrb[0].mxu1 %v336_v46 }
 0x152   :  { %1007 = vmatpush1.bf16.msra.mxu1 %v1357_v51 }
 0x153   :  { %1008 = vmatprep.subr.bf16.mxu1 %v1362_v53 }
 0x156   :  { %1009 = vmatpush1.bf16.msra.mxu1 %v1360_v54 }
 0x157   :  { %1010 = vmatprep.subr.bf16.mxu1 %v1365_v55 }
 0x15a   :  { %1011 = vmatpush1.bf16.msra.mxu1 %v1363_v56 }
 0x15b   :  { %1012 = vmatprep.subr.bf16.mxu1 %v1368_v57 }
 0x15e   :  { %1013 = vmatpush1.bf16.msra.mxu1 %v1366_v58 }
 0x15f   :  { %1014 = vmatprep.subr.bf16.mxu1 %v1371_v59 }
 0x162   :  { %1015 = vmatpush1.bf16.msra.mxu1 %v1369_v60 }
 0x163   :  { %1016 = vmatprep.subr.bf16.mxu1 %v1374_v61 }
 0x166   :  { %1017 = vmatpush1.bf16.msra.mxu1 %v1372_v62 }
 0x167   :  { %1018 = vmatprep.subr.bf16.mxu1 %v1377_v63 }
 0x16a   :  { %1019 = vmatpush1.bf16.msra.mxu1 %v1375_v0 }
 0x16b   :  { %1020 = vmatprep.subr.bf16.mxu1 %v1380_v1 }
 0x16e   :  { %1021 = vmatpush1.bf16.msra.mxu1 %v1378_v2 }
 0x16f   :  { %1022 = vmatprep.subr.bf16.mxu1 %v1383_v3 }
 0x172   :  { %1023 = vmatpush1.bf16.msra.mxu1 %v1381_v4 }
 0x173   :  { %1024 = vmatprep.subr.bf16.mxu1 %v1386_v5 }
 0x176   :  { %1025 = vmatpush1.bf16.msra.mxu1 %v1384_v6 }
 0x177   :  { %1026 = vmatprep.subr.bf16.mxu1 %v1389_v7 }
 0x17a   :  { %1027 = vmatpush1.bf16.msra.mxu1 %v1387_v8 }
 0x17b   :  { %1028 = vmatprep.subr.bf16.mxu1 %v1392_v9 }
 0x17e   :  { %1029 = vmatpush1.bf16.msra.mxu1 %v1390_v10 }
 0x17f   :  { %1030 = vmatprep.subr.bf16.mxu1 %v1395_v11 }
 0x182   :  { %1031 = vmatpush1.bf16.msra.mxu1 %v1393_v12 }
 0x183   :  { %1032 = vmatprep.subr.bf16.mxu1 %v1398_v13 }
 0x186   :  { %1033 = vmatpush1.bf16.msra.mxu1 %v1396_v14 }
 0x187   :  { %1034 = vmatprep.subr.bf16.mxu1 %v1401_v28 }
 0x18a   :  { %1035 = vmatpush1.bf16.msra.mxu1 %v1399_v29 }
 0x18b   :  { %1036 = vmatprep.subr.bf16.mxu1 %v1404_v30 }
 0x18e   :  { %1037 = vmatpush1.bf16.msra.mxu1 %v1402_v31 }
 0x224   :  { %v543_v18 = vpop.f32.mrb[0].mxu1 }
 0x225   :  { %v544_v19 = vadd.f32 %v543_v18, %v342_v16  ;;  %v545_v20 = vpop.f32.mrb[1].mxu1 }
 0x226   :  { %v546_v21 = vadd.f32 %v545_v20, %v346_v17  ;;  %v547_v22 = vpop.f32.mrb[2].mxu1 }
 0x227   :  { %v550_v23 = vmax.f32 %v544_v19, 0.0  ;;  %v548_v24 = vpop.f32.mrb[3].mxu1 }
 0x228   :  { %v551_v25 = vmax.f32 %v546_v21, 0.0 }
 0x229   :  { %v587_v27 = vpack.c.bf16 %v550_v23, %v550_v23 }
 0x22a   :  { %v588_v26 = vpack.c.bf16 %v551_v25, %v551_v25 }
 0x22c   :  { %792 = vmatprep.mubr.bf16.mxu0 %v588_v26 }
 0x22d   :  { %793 = vmatmul.mubr.bf16.vlgmr.msra.gmra.mrb[4].mxu0 %v587_v27 }
 0x300   :  { %v794_v38 = vpop.f32.mrb[4].mxu0 }
 0x301   :  { %v795_v39 = vadd.f32 %v794_v38, %v593_v35  ;;  %v796_v40 = vpop.f32.mrb[5].mxu0 }
 0x302   :  { %v797_v41 = vadd.f32 %v796_v40, %v597_v37  ;;  %v798_v42 = vpop.f32.mrb[6].mxu0 }
 0x303   :  { %v801_v43 = vmax.f32 %v795_v39, 0.0  ;;  %v799_v44 = vpop.f32.mrb[7].mxu0 }
 0x304   :  { %v802_v45 = vmax.f32 %v797_v41, 0.0 }
 0x305   :  { %v838_v47 = vpack.c.bf16 %v801_v43, %v801_v43 }
 0x306   :  { %v839_v46 = vpack.c.bf16 %v802_v45, %v802_v45 }
 0x308   :  { %1038 = vmatprep.mubr.bf16.mxu1 %v839_v46 }
 0x309   :  { %1039 = vmatmul.mubr.bf16.vlgmr.msra.gmra.mrb[4].mxu1 %v838_v47 }
 0x3dc   :  { %v1040_v51 = vpop.f32.mrb[4].mxu1 }
 0x3dd   :  { %v1041_v36 = vadd.f32 %v1040_v51, %v844_v50  ;;  %v1042_v52 = vpop.f32.mrb[5].mxu1 }
 0x3de   :  { %v1043_v53 = vpop.f32.mrb[6].mxu1 }
 0x3df   :  { %v1044_v54 = vpop.f32.mrb[7].mxu1  ;;  %v1049_v55 = vsel %vm1048_vm0, %v1041_v36, -1e+30 }
 0x3e0   :  { %1050 = vmax.xlane.f32.xlu0 %v1049_v55 }
 0x46d   :  { %v1051_v56 = vpop.xlane.xlu0 %1050 }
 0x46e   :  { %v1052_v57 = vsub.f32 %v1049_v55, %v1051_v56 }
 0x470   :  { %v1053_v58 = vmul.f32 1.442695, %v1052_v57 }
 0x472   :  { %1405 = vpow2.f32 %v1053_v58 }
 0x47c   :  { %v1406_v59 = vpop.eup %1405 }
 0x47d   :  { %v1055_v60 = vsel %vm1048_vm0, %v1406_v59, 0.0 }
 0x47e   :  { %1056 = vadd.xlane.f32.xlu0 %v1055_v60 }
 0x50b   :  { %v1057_v32 = vpop.xlane.xlu0 %1056 }
 0x50c   :  { %1407 = vlog2.f32 %v1057_v32 }
 0x516   :  { %v1408_v34 = vpop.eup %1407 }
 0x517   :  { %v1059_v61 = vmul.f32 0.6931472, %v1408_v34 }
 0x519   :  { %v1060_v62 = vsub.f32 %v1052_v57, %v1059_v61 }
 0x51b   :  { %v1061_v63 = vsel %vm1048_vm0, %v1060_v62, %v1041_v36 }
 0x51c   :  { %1062 = vst [vmem:[#allocation8] sm:$0xff] %v1061_v63 }
 0x51d   :  { %1486 = shalt.err (!%p1483_p0)
}
 0x51e   :  { %s1487_s25 = scalar_lea.hbm %s1596_s3, 128 }
 0x51f   :  { %p1488_p1 = scmp.ne.s32.totalorder %s1596_s3, %s1487_s25  ;;  %p1491_p2 = scmp.lt.u32.totalorder %s1487_s25, %s1596_s3 }
 0x521   :  { %p1493_p3 = pnand %p1491_p2, %p1488_p1 }
 0x523   :  { %1496 = shalt.err (!%p1493_p3)
}
 0x524   :  { %1072 = dma.vmem_to_hbm [thread:$0]  %s1070_s21, 128, %s1596_s3, [#allocation4]  }
 0x525   :  { %1501 = dma.done.wait [#allocation4], 128  }
 0x526   :  { %1502 = vsyncadd [#allocation4], 4294967168 }
 0x527   :  { %1076 = vsyncpa [#allocation3], 1 }
 0x528   :  { %1077 = vsyncpa [#allocation6], 1 }
 0x529   :  { %1078 = vsyncpa [#allocation4], 1 }

</bundles_post_ra>
